<compile_context>
chip_gen: v6e
topology: v6e:2x2x1
jax: 0.10.0
libtpu: 0.0.40
codegen_flags: <defaults>
</compile_context>

<pallas_src>
import jax
import jax.numpy as jnp
from jax.experimental import pallas as pl
from jax.experimental.pallas import tpu as pltpu


_VMEM_LIMIT_BYTES = 32 * 1024 * 1024  # safe on v5e/v6e (128 MiB) and v7x (64 MiB)


# ------------------------------- helpers --------------------------------------

def _round_up(x, m):
    return ((x + m - 1) // m) * m


def _pick_tile(n_pad):
    # Largest tile (up to 512, ~85% of HBM roofline per measurements) dividing n_pad.
    for t in (512, 384, 256, 128):
        if n_pad % t == 0:
            return t
    return 128


def _pad2(a, rows, cols):
    return jnp.pad(a, ((0, rows - a.shape[0]), (0, cols - a.shape[1])))


def _pad1(a, n):
    return jnp.pad(a, ((0, n - a.shape[0]),))


# ----------------------------- Pallas kernels ---------------------------------

def _gcn_layer_kernel(a_ref, x_ref, w_ref, b_ref, h_ref, acc_ref):
    """One grid step of  h = relu((A @ X) @ W + b).

    acc (f32, (T, Fpad)) accumulates the partial of A @ X over the k axis;
    the small (Fpad, Hpad) transform + bias + relu run once per row tile.
    """
    k = pl.program_id(1)

    @pl.when(k == 0)
    def _init():
        acc_ref[...] = jnp.zeros_like(acc_ref)

    acc_ref[...] += jnp.dot(a_ref[...], x_ref[...],
                            preferred_element_type=jnp.float32)

    @pl.when(k == pl.num_programs(1) - 1)
    def _finalize():
        ax = acc_ref[...].astype(jnp.bfloat16)               # MXU-native input
        h = jnp.dot(ax, w_ref[...], preferred_element_type=jnp.float32)
        h = jnp.maximum(h + b_ref[...], 0.0)                 # bias + relu in f32
        h_ref[...] = h.astype(h_ref.dtype)


def _gcn_layer_score_kernel(a_ref, x_ref, w_ref, b_ref, ws_ref, s_ref, acc_ref):
    """Last GCN layer fused with the linear part of the FC rating head:
    s[:, 0] = relu(...) @ fc_w[:H],  s[:, 1] = relu(...) @ fc_w[H:]
    (ws is lane-padded to 128 columns; cols >= 2 are zero).
    Avoids writing h3 and the (E, 2H) edge-feature matrix to HBM."""
    k = pl.program_id(1)

    @pl.when(k == 0)
    def _init():
        acc_ref[...] = jnp.zeros_like(acc_ref)

    acc_ref[...] += jnp.dot(a_ref[...], x_ref[...],
                            preferred_element_type=jnp.float32)

    @pl.when(k == pl.num_programs(1) - 1)
    def _finalize():
        ax = acc_ref[...].astype(jnp.bfloat16)
        h = jnp.dot(ax, w_ref[...], preferred_element_type=jnp.float32)
        h = jnp.maximum(h + b_ref[...], 0.0)
        s_ref[...] = jnp.dot(h.astype(jnp.bfloat16), ws_ref[...],
                             preferred_element_type=jnp.float32)


def _gcn_layer_call(a_norm, x, w, b, *, tile, ws=None):
    """Shared pallas_call builder for a GCN layer (optionally fused with the FC head)."""
    n_pad = a_norm.shape[0]
    f_pad = x.shape[1]
    h_pad = w.shape[1]
    grid = (n_pad // tile, n_pad // tile)

    in_specs = [
        pl.BlockSpec((tile, tile), lambda i, k: (i, k)),       # A tile (bf16)
        pl.BlockSpec((tile, f_pad), lambda i, k: (k, 0)),      # X row block (bf16)
        pl.BlockSpec((f_pad, h_pad), lambda i, k: (0, 0)),     # W, VMEM-resident
        pl.BlockSpec((1, h_pad), lambda i, k: (0, 0)),         # bias, VMEM-resident
    ]
    inputs = [a_norm, x, w, b]

    flops = 2 * n_pad * n_pad * f_pad + 2 * n_pad * f_pad * h_pad
    bytes_accessed = (a_norm.size * a_norm.dtype.itemsize
                      + x.size * x.dtype.itemsize
                      + w.size * w.dtype.itemsize
                      + b.size * b.dtype.itemsize)

    if ws is None:
        kernel = _gcn_layer_kernel
        out_shape = jax.ShapeDtypeStruct((n_pad, h_pad), jnp.bfloat16)
        out_spec = pl.BlockSpec((tile, h_pad), lambda i, k: (i, 0))
        bytes_accessed += n_pad * h_pad * 2
    else:
        kernel = _gcn_layer_score_kernel
        s_pad = ws.shape[1]                                    # 128 (lane-dense)
        in_specs.append(pl.BlockSpec((h_pad, s_pad), lambda i, k: (0, 0)))
        inputs.append(ws)
        out_shape = jax.ShapeDtypeStruct((n_pad, s_pad), jnp.float32)
        out_spec = pl.BlockSpec((tile, s_pad), lambda i, k: (i, 0))
        flops += 2 * n_pad * h_pad * s_pad
        bytes_accessed += ws.size * ws.dtype.itemsize + n_pad * s_pad * 4

    return pl.pallas_call(
        kernel,
        out_shape=out_shape,
        grid_spec=pltpu.PrefetchScalarGridSpec(
            num_scalar_prefetch=0,
            grid=grid,
            in_specs=in_specs,
            out_specs=out_spec,
            scratch_shapes=[pltpu.VMEM((tile, f_pad), jnp.float32)],
        ),
        compiler_params=pltpu.CompilerParams(
            dimension_semantics=(pltpu.PARALLEL, pltpu.ARBITRARY),
            vmem_limit_bytes=_VMEM_LIMIT_BYTES,
        ),
        cost_estimate=pl.CostEstimate(
            flops=int(flops),
            transcendentals=0,
            bytes_accessed=int(bytes_accessed),
        ),
    )(*inputs)


# ----------------------------- Glue (plain JAX) --------------------------------

def build_norm_adj(edge_index, num_nodes, n_pad):
    """Dense symmetric-normalized adjacency with self loops (PyG gcn_norm),
    zero-padded to (n_pad, n_pad), emitted in bf16.

    Matches add_remaining_self_loops: existing self loops keep their weight
    (no double count); duplicate edges accumulate, as in add-aggregation."""
    src, dst = edge_index[0], edge_index[1]
    a = jnp.zeros((n_pad, n_pad), jnp.float32)
    a = a.at[dst, src].add(1.0)                     # message j -> i lands at A[i, j]
    diag = jnp.arange(num_nodes)
    cur = a[diag, diag]
    a = a.at[diag, diag].set(jnp.where(cur > 0.0, cur, 1.0))   # add missing self loops
    deg = jnp.sum(a, axis=1)                        # padded rows -> deg 0
    safe = jnp.where(deg > 0.0, deg, 1.0)
    d_inv_sqrt = jnp.where(deg > 0.0, jax.lax.rsqrt(safe), 0.0)
    a = d_inv_sqrt[:, None] * a * d_inv_sqrt[None, :]
    return a.astype(jnp.bfloat16)


def gcn_rating_prediction(params, x, edge_index):
    n, f = x.shape
    hidden = params["w1"].shape[1]

    f_pad = _round_up(f, 128)                       # lane-pad tiny feature dims
    h_pad = _round_up(hidden, 128)
    n_pad = _round_up(max(n, 128), 128)
    tile = _pick_tile(n_pad)

    a_norm = build_norm_adj(edge_index, n, n_pad)                     # bf16 (n_pad, n_pad)
    x_p = _pad2(x, n_pad, f_pad).astype(jnp.bfloat16)

    w1 = _pad2(params["w1"], f_pad, h_pad).astype(jnp.bfloat16)
    w2 = _pad2(params["w2"], h_pad, h_pad).astype(jnp.bfloat16)
    w3 = _pad2(params["w3"], h_pad, h_pad).astype(jnp.bfloat16)
    b1 = _pad1(params["b1"], h_pad).reshape(1, h_pad).astype(jnp.float32)
    b2 = _pad1(params["b2"], h_pad).reshape(1, h_pad).astype(jnp.float32)
    b3 = _pad1(params["b3"], h_pad).reshape(1, h_pad).astype(jnp.float32)

    # Fold the linear FC head into per-node scores:
    #   logit(e) = h[src] @ fc_w[:H] + h[dst] @ fc_w[H:] + fc_b
    # Lane-pad the folded weight to 128 cols so the score output is lane-dense.
    fc_w = params["fc_w"]                                             # (2H, 1)
    ws = jnp.concatenate([fc_w[:hidden], fc_w[hidden:]], axis=1)      # (H, 2)
    ws = _pad2(ws, h_pad, 128).astype(jnp.bfloat16)

    h = _gcn_layer_call(a_norm, x_p, w1, b1, tile=tile)
    h = _gcn_layer_call(a_norm, h, w2, b2, tile=tile)
    scores = _gcn_layer_call(a_norm, h, w3, b3, tile=tile, ws=ws)     # (n_pad, 128) f32

    # O(E) elementwise epilogue (gather + sigmoid*4+1) stays as glue.
    src, dst = edge_index[0], edge_index[1]
    logits = scores[src, 0] + scores[dst, 1] + params["fc_b"][0]
    return jax.nn.sigmoid(logits) * 4.0 + 1.0                          # (E,)


def init_params(key, num_features, hidden_dim):
    ks = jax.random.split(key, 4)

    def glorot(k, shape):
        scale = jnp.sqrt(2.0 / (shape[0] + shape[1]))
        return jax.random.normal(k, shape, jnp.float32) * scale

    return {
        "w1": glorot(ks[0], (num_features, hidden_dim)),
        "b1": jnp.zeros((hidden_dim,), jnp.float32),
        "w2": glorot(ks[1], (hidden_dim, hidden_dim)),
        "b2": jnp.zeros((hidden_dim,), jnp.float32),
        "w3": glorot(ks[2], (hidden_dim, hidden_dim)),
        "b3": jnp.zeros((hidden_dim,), jnp.float32),
        "fc_w": glorot(ks[3], (hidden_dim * 2, 1)),
        "fc_b": jnp.zeros((1,), jnp.float32),
    }


if __name__ == "__main__":
    num_nodes = 16
    num_features = 8
    hidden_dim = 32
    num_edges = 24

    key = jax.random.PRNGKey(0)
    k_x, k_src, k_off, k_p = jax.random.split(key, 4)

    x = jax.random.normal(k_x, (num_nodes, num_features), jnp.float32)

    # edges with no self loops (dst = src + offset mod N, offset in [1, N-1])
    src = jax.random.randint(k_src, (num_edges,), 0, num_nodes)
    off = jax.random.randint(k_off, (num_edges,), 1, num_nodes)
    dst = (src + off) % num_nodes
    edge_index = jnp.stack([src, dst], axis=0).astype(jnp.int32)  # (2, E)

    params = init_params(k_p, num_features, hidden_dim)

    fwd = jax.jit(gcn_rating_prediction)
    ratings = fwd(params, x, edge_index)
    jax.block_until_ready(ratings)

    assert ratings.shape == (num_edges,)
    assert bool(jnp.all(ratings >= 1.0)) and bool(jnp.all(ratings <= 5.0))
    print("KERNEL_OK")
</pallas_src>

<mosaic_0001>
module attributes {stable_mosaic.version = 11 : i64} {
  func.func private @main(%arg0: i32) attributes {dimension_semantics = [#tpu.dimension_semantics<core_parallel>], iteration_bounds = array<i64: 2>, tpu.core_type = #tpu.core_type<sc_scalar_subcore>, window_params = []} {
    return
  }
}

module attributes {stable_mosaic.version = 11 : i64} {
  func.func private @main(%arg0: i32) attributes {dimension_semantics = [#tpu.dimension_semantics<core_parallel>], iteration_bounds = array<i64: 2>, tpu.core_type = #tpu.core_type<sc_scalar_subcore>, window_params = []} {
    return
  }
}

module attributes {stable_mosaic.version = 11 : i64} {
  func.func @_gcn_layer_kernel(%arg0: i32, %arg1: i32, %arg2: memref<128x128xbf16, #tpu.memory_space<vmem>>, %arg3: memref<128x128xbf16, #tpu.memory_space<vmem>>, %arg4: memref<128x128xbf16, #tpu.memory_space<vmem>>, %arg5: memref<1x128xf32, #tpu.memory_space<vmem>>, %arg6: memref<128x128xbf16, #tpu.memory_space<vmem>>, %arg7: memref<128x128xf32, #tpu.memory_space<vmem>>) attributes {dimension_semantics = [#tpu.dimension_semantics<parallel>, #tpu.dimension_semantics<arbitrary>], iteration_bounds = array<i64: 1, 1>, scalar_prefetch = 0 : i64, scratch_operands = 1 : i64, tpu.core_type = #tpu.core_type<tc>, window_params = [{transform_indices = @transform_0, window_bounds = array<i64: 128, 128>}, {transform_indices = @transform_1, window_bounds = array<i64: 128, 128>}, {pipeline_mode = #tpu.pipeline_mode<synchronous>, transform_indices = @transform_2, window_bounds = array<i64: 128, 128>}, {pipeline_mode = #tpu.pipeline_mode<synchronous>, transform_indices = @transform_3, window_bounds = array<i64: 1, 128>}, {transform_indices = @transform_4, window_bounds = array<i64: 128, 128>}]} {
    %c0_i32 = arith.constant 0 : i32
    %0 = arith.cmpi eq, %arg1, %c0_i32 : i32
    %1 = arith.extui %0 : i1 to i32
    %c0_i32_0 = arith.constant 0 : i32
    %2 = arith.cmpi ne, %1, %c0_i32_0 : i32
    scf.if %2 {
      %cst_10 = arith.constant 0.000000e+00 : f32
      %12 = vector.broadcast %cst_10 : f32 to vector<128x128xf32>
      %c0_11 = arith.constant 0 : index
      %c0_12 = arith.constant 0 : index
      %13 = vector.load %arg7[%c0_11, %c0_12] : memref<128x128xf32, #tpu.memory_space<vmem>>, vector<128x128xf32>
      tpu.vector_store %arg7[%c0_11, %c0_12], %12 {strides = array<i32>} : memref<128x128xf32, #tpu.memory_space<vmem>>, vector<128x128xf32>,
    } else {
    }
    %c0 = arith.constant 0 : index
    %c0_1 = arith.constant 0 : index
    %3 = vector.load %arg7[%c0, %c0_1] : memref<128x128xf32, #tpu.memory_space<vmem>>, vector<128x128xf32>
    %c0_2 = arith.constant 0 : index
    %c0_3 = arith.constant 0 : index
    %4 = vector.load %arg2[%c0_2, %c0_3] : memref<128x128xbf16, #tpu.memory_space<vmem>>, vector<128x128xbf16>
    %c0_4 = arith.constant 0 : index
    %c0_5 = arith.constant 0 : index
    %5 = vector.load %arg3[%c0_4, %c0_5] : memref<128x128xbf16, #tpu.memory_space<vmem>>, vector<128x128xbf16>
    %cst = arith.constant dense<0.000000e+00> : vector<128x128xf32>
    %6 = tpu.matmul %4, %5, %cst {dimension_numbers = #tpu.dot_dimension_numbers<[1], [0], [0], [1], [0, 0, 1, 1], [], []>} : vector<128x128xbf16>, vector<128x128xbf16>, vector<128x128xf32> -> vector<128x128xf32>
    %7 = arith.addf %3, %6 : vector<128x128xf32>
    %c0_6 = arith.constant 0 : index
    %c0_7 = arith.constant 0 : index
    %8 = vector.load %arg7[%c0_6, %c0_7] : memref<128x128xf32, #tpu.memory_space<vmem>>, vector<128x128xf32>
    tpu.vector_store %arg7[%c0_6, %c0_7], %7 {strides = array<i32>} : memref<128x128xf32, #tpu.memory_space<vmem>>, vector<128x128xf32>,
    %c0_i32_8 = arith.constant 0 : i32
    %9 = arith.cmpi eq, %arg1, %c0_i32_8 : i32
    %10 = arith.extui %9 : i1 to i32
    %c0_i32_9 = arith.constant 0 : i32
    %11 = arith.cmpi ne, %10, %c0_i32_9 : i32
    scf.if %11 {
      %c0_10 = arith.constant 0 : index
      %c0_11 = arith.constant 0 : index
      %12 = vector.load %arg7[%c0_10, %c0_11] : memref<128x128xf32, #tpu.memory_space<vmem>>, vector<128x128xf32>
      %13 = arith.truncf %12 : vector<128x128xf32> to vector<128x128xbf16>
      %c0_12 = arith.constant 0 : index
      %c0_13 = arith.constant 0 : index
      %14 = vector.load %arg4[%c0_12, %c0_13] : memref<128x128xbf16, #tpu.memory_space<vmem>>, vector<128x128xbf16>
      %cst_14 = arith.constant dense<0.000000e+00> : vector<128x128xf32>
      %15 = tpu.matmul %13, %14, %cst_14 {dimension_numbers = #tpu.dot_dimension_numbers<[1], [0], [0], [1], [0, 0, 1, 1], [], []>} : vector<128x128xbf16>, vector<128x128xbf16>, vector<128x128xf32> -> vector<128x128xf32>
      %c0_15 = arith.constant 0 : index
      %c0_16 = arith.constant 0 : index
      %16 = vector.load %arg5[%c0_15, %c0_16] : memref<1x128xf32, #tpu.memory_space<vmem>>, vector<1x128xf32>
      %17 = vector.broadcast %16 : vector<1x128xf32> to vector<128x128xf32>
      %18 = arith.addf %15, %17 : vector<128x128xf32>
      %cst_17 = arith.constant 0.000000e+00 : f32
      %19 = vector.broadcast %cst_17 : f32 to vector<128x128xf32>
      %20 = arith.maximumf %18, %19 : vector<128x128xf32>
      %21 = arith.truncf %20 : vector<128x128xf32> to vector<128x128xbf16>
      %c0_18 = arith.constant 0 : index
      %c0_19 = arith.constant 0 : index
      %22 = vector.load %arg6[%c0_18, %c0_19] : memref<128x128xbf16, #tpu.memory_space<vmem>>, vector<128x128xbf16>
      tpu.vector_store %arg6[%c0_18, %c0_19], %21 {strides = array<i32>} : memref<128x128xbf16, #tpu.memory_space<vmem>>, vector<128x128xbf16>,
    } else {
    }
    return
  }
  func.func @transform_0(%arg0: i32, %arg1: i32) -> (i32, i32) {
    %c0_i32 = arith.constant 0 : i32
    return %arg0, %arg1 : i32, i32
  }
  func.func @transform_1(%arg0: i32, %arg1: i32) -> (i32, i32) {
    %c0_i32 = arith.constant 0 : i32
    %c0_i32_0 = arith.constant 0 : i32
    return %arg1, %c0_i32 : i32, i32
  }
  func.func @transform_2(%arg0: i32, %arg1: i32) -> (i32, i32) {
    %c0_i32 = arith.constant 0 : i32
    %c0_i32_0 = arith.constant 0 : i32
    %c0_i32_1 = arith.constant 0 : i32
    return %c0_i32, %c0_i32_0 : i32, i32
  }
  func.func @transform_3(%arg0: i32, %arg1: i32) -> (i32, i32) {
    %c0_i32 = arith.constant 0 : i32
    %c0_i32_0 = arith.constant 0 : i32
    %c0_i32_1 = arith.constant 0 : i32
    return %c0_i32, %c0_i32_0 : i32, i32
  }
  func.func @transform_4(%arg0: i32, %arg1: i32) -> (i32, i32) {
    %c0_i32 = arith.constant 0 : i32
    %c0_i32_0 = arith.constant 0 : i32
    return %arg0, %c0_i32 : i32, i32
  }
}

module attributes {stable_mosaic.version = 11 : i64} {
  func.func @_gcn_layer_score_kernel(%arg0: i32, %arg1: i32, %arg2: memref<128x128xbf16, #tpu.memory_space<vmem>>, %arg3: memref<128x128xbf16, #tpu.memory_space<vmem>>, %arg4: memref<128x128xbf16, #tpu.memory_space<vmem>>, %arg5: memref<1x128xf32, #tpu.memory_space<vmem>>, %arg6: memref<128x128xbf16, #tpu.memory_space<vmem>>, %arg7: memref<128x128xf32, #tpu.memory_space<vmem>>, %arg8: memref<128x128xf32, #tpu.memory_space<vmem>>) attributes {dimension_semantics = [#tpu.dimension_semantics<parallel>, #tpu.dimension_semantics<arbitrary>], iteration_bounds = array<i64: 1, 1>, scalar_prefetch = 0 : i64, scratch_operands = 1 : i64, tpu.core_type = #tpu.core_type<tc>, window_params = [{transform_indices = @transform_0, window_bounds = array<i64: 128, 128>}, {transform_indices = @transform_1, window_bounds = array<i64: 128, 128>}, {pipeline_mode = #tpu.pipeline_mode<synchronous>, transform_indices = @transform_2, window_bounds = array<i64: 128, 128>}, {pipeline_mode = #tpu.pipeline_mode<synchronous>, transform_indices = @transform_3, window_bounds = array<i64: 1, 128>}, {pipeline_mode = #tpu.pipeline_mode<synchronous>, transform_indices = @transform_4, window_bounds = array<i64: 128, 128>}, {transform_indices = @transform_5, window_bounds = array<i64: 128, 128>}]} {
    %c0_i32 = arith.constant 0 : i32
    %0 = arith.cmpi eq, %arg1, %c0_i32 : i32
    %1 = arith.extui %0 : i1 to i32
    %c0_i32_0 = arith.constant 0 : i32
    %2 = arith.cmpi ne, %1, %c0_i32_0 : i32
    scf.if %2 {
      %cst_10 = arith.constant 0.000000e+00 : f32
      %12 = vector.broadcast %cst_10 : f32 to vector<128x128xf32>
      %c0_11 = arith.constant 0 : index
      %c0_12 = arith.constant 0 : index
      %13 = vector.load %arg8[%c0_11, %c0_12] : memref<128x128xf32, #tpu.memory_space<vmem>>, vector<128x128xf32>
      tpu.vector_store %arg8[%c0_11, %c0_12], %12 {strides = array<i32>} : memref<128x128xf32, #tpu.memory_space<vmem>>, vector<128x128xf32>,
    } else {
    }
    %c0 = arith.constant 0 : index
    %c0_1 = arith.constant 0 : index
    %3 = vector.load %arg8[%c0, %c0_1] : memref<128x128xf32, #tpu.memory_space<vmem>>, vector<128x128xf32>
    %c0_2 = arith.constant 0 : index
    %c0_3 = arith.constant 0 : index
    %4 = vector.load %arg2[%c0_2, %c0_3] : memref<128x128xbf16, #tpu.memory_space<vmem>>, vector<128x128xbf16>
    %c0_4 = arith.constant 0 : index
    %c0_5 = arith.constant 0 : index
    %5 = vector.load %arg3[%c0_4, %c0_5] : memref<128x128xbf16, #tpu.memory_space<vmem>>, vector<128x128xbf16>
    %cst = arith.constant dense<0.000000e+00> : vector<128x128xf32>
    %6 = tpu.matmul %4, %5, %cst {dimension_numbers = #tpu.dot_dimension_numbers<[1], [0], [0], [1], [0, 0, 1, 1], [], []>} : vector<128x128xbf16>, vector<128x128xbf16>, vector<128x128xf32> -> vector<128x128xf32>
    %7 = arith.addf %3, %6 : vector<128x128xf32>
    %c0_6 = arith.constant 0 : index
    %c0_7 = arith.constant 0 : index
    %8 = vector.load %arg8[%c0_6, %c0_7] : memref<128x128xf32, #tpu.memory_space<vmem>>, vector<128x128xf32>
    tpu.vector_store %arg8[%c0_6, %c0_7], %7 {strides = array<i32>} : memref<128x128xf32, #tpu.memory_space<vmem>>, vector<128x128xf32>,
    %c0_i32_8 = arith.constant 0 : i32
    %9 = arith.cmpi eq, %arg1, %c0_i32_8 : i32
    %10 = arith.extui %9 : i1 to i32
    %c0_i32_9 = arith.constant 0 : i32
    %11 = arith.cmpi ne, %10, %c0_i32_9 : i32
    scf.if %11 {
      %c0_10 = arith.constant 0 : index
      %c0_11 = arith.constant 0 : index
      %12 = vector.load %arg8[%c0_10, %c0_11] : memref<128x128xf32, #tpu.memory_space<vmem>>, vector<128x128xf32>
      %13 = arith.truncf %12 : vector<128x128xf32> to vector<128x128xbf16>
      %c0_12 = arith.constant 0 : index
      %c0_13 = arith.constant 0 : index
      %14 = vector.load %arg4[%c0_12, %c0_13] : memref<128x128xbf16, #tpu.memory_space<vmem>>, vector<128x128xbf16>
      %cst_14 = arith.constant dense<0.000000e+00> : vector<128x128xf32>
      %15 = tpu.matmul %13, %14, %cst_14 {dimension_numbers = #tpu.dot_dimension_numbers<[1], [0], [0], [1], [0, 0, 1, 1], [], []>} : vector<128x128xbf16>, vector<128x128xbf16>, vector<128x128xf32> -> vector<128x128xf32>
      %c0_15 = arith.constant 0 : index
      %c0_16 = arith.constant 0 : index
      %16 = vector.load %arg5[%c0_15, %c0_16] : memref<1x128xf32, #tpu.memory_space<vmem>>, vector<1x128xf32>
      %17 = vector.broadcast %16 : vector<1x128xf32> to vector<128x128xf32>
      %18 = arith.addf %15, %17 : vector<128x128xf32>
      %cst_17 = arith.constant 0.000000e+00 : f32
      %19 = vector.broadcast %cst_17 : f32 to vector<128x128xf32>
      %20 = arith.maximumf %18, %19 : vector<128x128xf32>
      %21 = arith.truncf %20 : vector<128x128xf32> to vector<128x128xbf16>
      %c0_18 = arith.constant 0 : index
      %c0_19 = arith.constant 0 : index
      %22 = vector.load %arg6[%c0_18, %c0_19] : memref<128x128xbf16, #tpu.memory_space<vmem>>, vector<128x128xbf16>
      %cst_20 = arith.constant dense<0.000000e+00> : vector<128x128xf32>
      %23 = tpu.matmul %21, %22, %cst_20 {dimension_numbers = #tpu.dot_dimension_numbers<[1], [0], [0], [1], [0, 0, 1, 1], [], []>} : vector<128x128xbf16>, vector<128x128xbf16>, vector<128x128xf32> -> vector<128x128xf32>
      %c0_21 = arith.constant 0 : index
      %c0_22 = arith.constant 0 : index
      %24 = vector.load %arg7[%c0_21, %c0_22] : memref<128x128xf32, #tpu.memory_space<vmem>>, vector<128x128xf32>
      tpu.vector_store %arg7[%c0_21, %c0_22], %23 {strides = array<i32>} : memref<128x128xf32, #tpu.memory_space<vmem>>, vector<128x128xf32>,
    } else {
    }
    return
  }
  func.func @transform_0(%arg0: i32, %arg1: i32) -> (i32, i32) {
    %c0_i32 = arith.constant 0 : i32
    return %arg0, %arg1 : i32, i32
  }
  func.func @transform_1(%arg0: i32, %arg1: i32) -> (i32, i32) {
    %c0_i32 = arith.constant 0 : i32
    %c0_i32_0 = arith.constant 0 : i32
    return %arg1, %c0_i32 : i32, i32
  }
  func.func @transform_2(%arg0: i32, %arg1: i32) -> (i32, i32) {
    %c0_i32 = arith.constant 0 : i32
    %c0_i32_0 = arith.constant 0 : i32
    %c0_i32_1 = arith.constant 0 : i32
    return %c0_i32, %c0_i32_0 : i32, i32
  }
  func.func @transform_3(%arg0: i32, %arg1: i32) -> (i32, i32) {
    %c0_i32 = arith.constant 0 : i32
    %c0_i32_0 = arith.constant 0 : i32
    %c0_i32_1 = arith.constant 0 : i32
    return %c0_i32, %c0_i32_0 : i32, i32
  }
  func.func @transform_4(%arg0: i32, %arg1: i32) -> (i32, i32) {
    %c0_i32 = arith.constant 0 : i32
    %c0_i32_0 = arith.constant 0 : i32
    %c0_i32_1 = arith.constant 0 : i32
    return %c0_i32, %c0_i32_0 : i32, i32
  }
  func.func @transform_5(%arg0: i32, %arg1: i32) -> (i32, i32) {
    %c0_i32 = arith.constant 0 : i32
    %c0_i32_0 = arith.constant 0 : i32
    return %arg0, %c0_i32 : i32, i32
  }
}

</mosaic_0001>

<bundles_post_ra>
// kernel: gcn_rating_prediction.5
= control target key start
LH: loop header
LB: loop body
LE: loop exit
PB: predicated region body
PF: predicated region fallthrough
CT: control target
= control target key end

     0   :  { %s1116_s1 = inlined_call_operand.vmem [shape: bf16[128,128], index: 1, kind: input, shape index: {}]   ;;  %s1117_s0 = inlined_call_operand.vmem [shape: bf16[128,128], index: 0, kind: input, shape index: {}]   ;;  %s1118_s2 = inlined_call_operand.vmem [shape: bf16[128,128], index: 2, kind: input, shape index: {}]   ;;  %s1119_s4 = inlined_call_operand.vmem [shape: bf16[128,128], index: 4, kind: input, shape index: {}]   ;;  %s1120_s3 = inlined_call_operand.vmem [shape: f32[1,128], index: 3, kind: input, shape index: {}]   ;;  %s1121_s5 = inlined_call_operand.vmem [shape: f32[128,128], index: 5, kind: output, shape index: {}]  }
   0x1   :  { %v907_v0 = vld [vmem:[%s1116_s1 + $0x38] sm:$0xff]   ;;  %v908_v1 = vld [vmem:[%s1116_s1 + $0x30] sm:$0xff]   ;;  %v909_v2 = vld [vmem:[%s1116_s1 + $0x28] sm:$0xff]  }
   0x2   :  { %795 = vmatprep.subr.bf16.mxu0 %v907_v0  ;;  %v910_v3 = vld [vmem:[%s1116_s1 + $0x20] sm:$0xff]   ;;  %v911_v5 = vld [vmem:[%s1116_s1 + $0x18] sm:$0xff]   ;;  %v912_v6 = vld [vmem:[%s1116_s1 + $0x10] sm:$0xff]  }
   0x3   :  { %796 = vmatpush3.bf16.msra.mxu0 %v907_v0  ;;  %v915_v4 = vld [vmem:[%s1117_s0] sm:$0xff]   ;;  %v923_v7 = vld [vmem:[%s1118_s2 + $0x38] sm:$0xff]   ;;  %v924_v8 = vld [vmem:[%s1118_s2 + $0x30] sm:$0xff]  }
   0x4   :  { %797 = vmatprep.subr.bf16.mxu0 %v908_v1  ;;  %811 = vmatprep.mubr.bf16.mxu0 %v915_v4  ;;  %v913_v9 = vld [vmem:[%s1116_s1 + $0x8] sm:$0xff]   ;;  %v914_v11 = vld [vmem:[%s1116_s1] sm:$0xff]   ;;  %v927_v13 = vld [vmem:[%s1118_s2 + $0x18] sm:$0xff]  }
   0x5   :  { %827 = vmatprep.subr.bf16.mxu1 %v923_v7  ;;  %v925_v10 = vld [vmem:[%s1118_s2 + $0x28] sm:$0xff]   ;;  %v926_v12 = vld [vmem:[%s1118_s2 + $0x20] sm:$0xff]   ;;  %v917_v15 = vld [vmem:[%s1117_s0 + $0x10] sm:$0xff]  }
   0x6   :  { %828 = vmatpush3.bf16.msra.mxu1 %v923_v7  ;;  %v916_v14 = vld [vmem:[%s1117_s0 + $0x8] sm:$0xff]   ;;  %v928_v16 = vld [vmem:[%s1118_s2 + $0x10] sm:$0xff]   ;;  %v918_v17 = vld [vmem:[%s1117_s0 + $0x18] sm:$0xff]  }
   0x7   :  { %798 = vmatpush3.bf16.msra.mxu0 %v908_v1  ;;  %829 = vmatprep.subr.bf16.mxu1 %v924_v8  ;;  %v919_v18 = vld [vmem:[%s1117_s0 + $0x20] sm:$0xff]   ;;  %v920_v19 = vld [vmem:[%s1117_s0 + $0x28] sm:$0xff]   ;;  %v921_v20 = vld [vmem:[%s1117_s0 + $0x30] sm:$0xff]  }
   0x8   :  { %799 = vmatprep.subr.bf16.mxu0 %v909_v2  ;;  %v922_v21 = vld [vmem:[%s1117_s0 + $0x38] sm:$0xff]   ;;  %v929_v22 = vld [vmem:[%s1118_s2 + $0x8] sm:$0xff]   ;;  %v930_v23 = vld [vmem:[%s1118_s2] sm:$0xff]  }
   0x9   :  { %v931_v24 = vld [vmem:[%s1119_s4 + $0x38] sm:$0xff]   ;;  %v932_v25 = vld [vmem:[%s1119_s4 + $0x30] sm:$0xff]   ;;  %v933_v26 = vld [vmem:[%s1119_s4 + $0x28] sm:$0xff]  }
   0xa   :  { %830 = vmatpush3.bf16.msra.mxu1 %v924_v8  ;;  %v934_v27 = vld [vmem:[%s1119_s4 + $0x20] sm:$0xff]   ;;  %v935_v28 = vld [vmem:[%s1119_s4 + $0x18] sm:$0xff]   ;;  %v936_v53 = vld [vmem:[%s1119_s4 + $0x10] sm:$0xff]  }
   0xb   :  { %800 = vmatpush3.bf16.msra.mxu0 %v909_v2  ;;  %831 = vmatprep.subr.bf16.mxu1 %v925_v10  ;;  %v937_v54 = vld [vmem:[%s1119_s4 + $0x8] sm:$0xff]   ;;  %v938_v55 = vld [vmem:[%s1119_s4] sm:$0xff]  }
   0xc   :  { %801 = vmatprep.subr.bf16.mxu0 %v910_v3  ;;  %v730_v58 = vld [vmem:[%s1120_s3] ss:$0 sm:$0xff] }
   0xe   :  { %832 = vmatpush3.bf16.msra.mxu1 %v925_v10 }
   0xf   :  { %802 = vmatpush3.bf16.msra.mxu0 %v910_v3  ;;  %833 = vmatprep.subr.bf16.mxu1 %v926_v12 }
  0x10   :  { %803 = vmatprep.subr.bf16.mxu0 %v911_v5 }
  0x12   :  { %834 = vmatpush3.bf16.msra.mxu1 %v926_v12 }
  0x13   :  { %804 = vmatpush3.bf16.msra.mxu0 %v911_v5  ;;  %835 = vmatprep.subr.bf16.mxu1 %v927_v13 }
  0x14   :  { %805 = vmatprep.subr.bf16.mxu0 %v912_v6 }
  0x16   :  { %836 = vmatpush3.bf16.msra.mxu1 %v927_v13 }
  0x17   :  { %806 = vmatpush3.bf16.msra.mxu0 %v912_v6  ;;  %837 = vmatprep.subr.bf16.mxu1 %v928_v16 }
  0x18   :  { %807 = vmatprep.subr.bf16.mxu0 %v913_v9 }
  0x1a   :  { %838 = vmatpush3.bf16.msra.mxu1 %v928_v16 }
  0x1b   :  { %808 = vmatpush3.bf16.msra.mxu0 %v913_v9  ;;  %839 = vmatprep.subr.bf16.mxu1 %v929_v22 }
  0x1c   :  { %809 = vmatprep.subr.bf16.mxu0 %v914_v11 }
  0x1e   :  { %840 = vmatpush3.bf16.msra.mxu1 %v929_v22 }
  0x1f   :  { %810 = vmatpush3.bf16.msra.mxu0 %v914_v11  ;;  %841 = vmatprep.subr.bf16.mxu1 %v930_v23 }
  0x20   :  { %859 = vmatprep.subr.bf16.mxu0 %v931_v24 }
  0x22   :  { %812 = vmatmul.mubr.bf16.vlgmr.msra.gmra.mxu0 %v916_v14  ;;  %842 = vmatpush3.bf16.msra.mxu1 %v930_v23 }
  0x23   :  { %815 = vmatprep.mubr.bf16.mxu0 %v917_v15  ;;  %891 = vmatprep.subr.bf16.mxu1 %v931_v24 }
  0x24   :  { %860 = vmatpush3.bf16.msra.mxu0 %v931_v24 }
  0x25   :  { %861 = vmatprep.subr.bf16.mxu0 %v932_v25 }
  0x28   :  { %862 = vmatpush3.bf16.msra.mxu0 %v932_v25 }
  0x29   :  { %863 = vmatprep.subr.bf16.mxu0 %v933_v26 }
  0x2a   :  { %816 = vmatmul.mubr.bf16.gmra.mxu0 %v918_v17 }
  0x2b   :  { %819 = vmatprep.mubr.bf16.mxu0 %v919_v18 }
  0x2c   :  { %864 = vmatpush3.bf16.msra.mxu0 %v933_v26 }
  0x2d   :  { %865 = vmatprep.subr.bf16.mxu0 %v934_v27 }
  0x30   :  { %866 = vmatpush3.bf16.msra.mxu0 %v934_v27 }
  0x31   :  { %867 = vmatprep.subr.bf16.mxu0 %v935_v28 }
  0x32   :  { %820 = vmatmul.mubr.bf16.gmra.mxu0 %v920_v19 }
  0x33   :  { %823 = vmatprep.mubr.bf16.mxu0 %v921_v20 }
  0x34   :  { %868 = vmatpush3.bf16.msra.mxu0 %v935_v28 }
  0x35   :  { %869 = vmatprep.subr.bf16.mxu0 %v936_v53 }
  0x38   :  { %870 = vmatpush3.bf16.msra.mxu0 %v936_v53 }
  0x39   :  { %871 = vmatprep.subr.bf16.mxu0 %v937_v54 }
  0x3a   :  { %824 = vmatmul.mubr.bf16.gmra.mxu0 %v922_v21 }
  0x3c   :  { %872 = vmatpush3.bf16.msra.mxu0 %v937_v54 }
  0x3d   :  { %873 = vmatprep.subr.bf16.mxu0 %v938_v55 }
  0x40   :  { %874 = vmatpush3.bf16.msra.mxu0 %v938_v55 }
  0xe2   :  { %v813_v29 = vpop.f32.mrf.mxu0 }
  0xe4   :  { %v219_v30 = vpop.f32.mrf.mxu0 }
  0xe6   :  { %v814_v31 = vpop.f32.mrf.mxu0 }
  0xe7   :  { %v334_v34 = vpack.c.bf16 %v814_v31, %v813_v29 }
  0xe8   :  { %v222_v32 = vpop.f32.mrf.mxu0 }
  0xe9   :  { %v333_v33 = vpack.c.bf16 %v222_v32, %v219_v30 }
  0xea   :  { %v817_v35 = vpop.f32.mrf.mxu0 }
  0xeb   :  { %843 = vmatprep.mubr.bf16.mxu1 %v333_v33 }
  0xec   :  { %v235_v36 = vpop.f32.mrf.mxu0  ;;  %844 = vmatmul.mubr.bf16.vlgmr.msra.gmra.mxu1 %v334_v34 }
  0xed   :  { %899 = vmatpush3.bf16.msra.mxu1 %v931_v24 }
  0xee   :  { %v818_v37 = vpop.f32.mrf.mxu0  ;;  %892 = vmatprep.subr.bf16.mxu1 %v932_v25 }
  0xef   :  { %v336_v40 = vpack.c.bf16 %v818_v37, %v817_v35 }
  0xf0   :  { %v238_v38 = vpop.f32.mrf.mxu0 }
  0xf1   :  { %v335_v39 = vpack.c.bf16 %v238_v38, %v235_v36  ;;  %900 = vmatpush3.bf16.msra.mxu1 %v932_v25 }
  0xf2   :  { %v821_v41 = vpop.f32.mrf.mxu0  ;;  %893 = vmatprep.subr.bf16.mxu1 %v933_v26 }
  0xf3   :  { %847 = vmatprep.mubr.bf16.mxu1 %v335_v39 }
  0xf4   :  { %v251_v42 = vpop.f32.mrf.mxu0  ;;  %848 = vmatmul.mubr.bf16.gmra.mxu1 %v336_v40 }
  0xf5   :  { %901 = vmatpush3.bf16.msra.mxu1 %v933_v26 }
  0xf6   :  { %v822_v43 = vpop.f32.mrf.mxu0  ;;  %894 = vmatprep.subr.bf16.mxu1 %v934_v27 }
  0xf7   :  { %v338_v46 = vpack.c.bf16 %v822_v43, %v821_v41 }
  0xf8   :  { %v254_v44 = vpop.f32.mrf.mxu0 }
  0xf9   :  { %v337_v45 = vpack.c.bf16 %v254_v44, %v251_v42  ;;  %902 = vmatpush3.bf16.msra.mxu1 %v934_v27 }
  0xfa   :  { %v825_v47 = vpop.f32.mrf.mxu0  ;;  %895 = vmatprep.subr.bf16.mxu1 %v935_v28 }
  0xfb   :  { %851 = vmatprep.mubr.bf16.mxu1 %v337_v45 }
  0xfc   :  { %v267_v48 = vpop.f32.mrf.mxu0  ;;  %852 = vmatmul.mubr.bf16.gmra.mxu1 %v338_v46 }
  0xfd   :  { %903 = vmatpush3.bf16.msra.mxu1 %v935_v28 }
  0xfe   :  { %v826_v49 = vpop.f32.mrf.mxu0  ;;  %896 = vmatprep.subr.bf16.mxu1 %v936_v53 }
  0xff   :  { %v340_v52 = vpack.c.bf16 %v826_v49, %v825_v47 }
 0x100   :  { %v270_v50 = vpop.f32.mrf.mxu0 }
 0x101   :  { %v339_v51 = vpack.c.bf16 %v270_v50, %v267_v48  ;;  %904 = vmatpush3.bf16.msra.mxu1 %v936_v53 }
 0x102   :  { %897 = vmatprep.subr.bf16.mxu1 %v937_v54 }
 0x103   :  { %855 = vmatprep.mubr.bf16.mxu1 %v339_v51 }
 0x104   :  { %856 = vmatmul.mubr.bf16.gmra.mxu1 %v340_v52 }
 0x105   :  { %905 = vmatpush3.bf16.msra.mxu1 %v937_v54 }
 0x106   :  { %898 = vmatprep.subr.bf16.mxu1 %v938_v55 }
 0x109   :  { %906 = vmatpush3.bf16.msra.mxu1 %v938_v55 }
 0x1ac   :  { %v845_v56 = vpop.f32.mrf.mxu1 }
 0x1ad   :  { %v455_v62 = vadd.f32 %v845_v56, %v730_v58 }
 0x1ae   :  { %v446_v57 = vpop.f32.mrf.mxu1 }
 0x1af   :  { %v447_v60 = vadd.f32 %v730_v58, %v446_v57  ;;  %v511_v5 = vmax.f32 %v455_v62, 0.0 }
 0x1b0   :  { %v846_v59 = vpop.f32.mrf.mxu1 }
 0x1b1   :  { %v458_v61 = vadd.f32 %v846_v59, %v730_v58  ;;  %v509_v3 = vmax.f32 %v447_v60, 0.0 }
 0x1b2   :  { %v449_v63 = vpop.f32.mrf.mxu1 }
 0x1b3   :  { %v450_v0 = vadd.f32 %v730_v58, %v449_v63  ;;  %v512_v1 = vmax.f32 %v458_v61, 0.0 }
 0x1b4   :  { %v849_v2 = vpop.f32.mrf.mxu1 }
 0x1b5   :  { %v510_v4 = vmax.f32 %v450_v0, 0.0  ;;  %v526_v8 = vpack.c.bf16 %v512_v1, %v511_v5  ;;  %v471_v12 = vadd.f32 %v849_v2, %v730_v58 }
 0x1b6   :  { %v462_v6 = vpop.f32.mrf.mxu1 }
 0x1b7   :  { %v525_v7 = vpack.c.bf16 %v510_v4, %v509_v3  ;;  %v463_v10 = vadd.f32 %v730_v58, %v462_v6  ;;  %v515_v19 = vmax.f32 %v471_v12, 0.0 }
 0x1b8   :  { %v850_v9 = vpop.f32.mrf.mxu1 }
 0x1b9   :  { %v474_v11 = vadd.f32 %v850_v9, %v730_v58  ;;  %875 = vmatprep.mubr.bf16.mxu0 %v525_v7  ;;  %v513_v17 = vmax.f32 %v463_v10, 0.0 }
 0x1ba   :  { %v465_v13 = vpop.f32.mrf.mxu1  ;;  %876 = vmatmul.mubr.bf16.vlgmr.msra.gmra.mxu0 %v526_v8 }
 0x1bb   :  { %v466_v14 = vadd.f32 %v730_v58, %v465_v13  ;;  %v516_v15 = vmax.f32 %v474_v11, 0.0 }
 0x1bc   :  { %v853_v16 = vpop.f32.mrf.mxu1 }
 0x1bd   :  { %v514_v18 = vmax.f32 %v466_v14, 0.0  ;;  %v528_v22 = vpack.c.bf16 %v516_v15, %v515_v19  ;;  %v487_v26 = vadd.f32 %v853_v16, %v730_v58 }
 0x1be   :  { %v478_v20 = vpop.f32.mrf.mxu1 }
 0x1bf   :  { %v527_v21 = vpack.c.bf16 %v514_v18, %v513_v17  ;;  %v479_v24 = vadd.f32 %v730_v58, %v478_v20  ;;  %v519_v33 = vmax.f32 %v487_v26, 0.0 }
 0x1c0   :  { %v854_v23 = vpop.f32.mrf.mxu1 }
 0x1c1   :  { %v490_v25 = vadd.f32 %v854_v23, %v730_v58  ;;  %879 = vmatprep.mubr.bf16.mxu0 %v527_v21  ;;  %v517_v31 = vmax.f32 %v479_v24, 0.0 }
 0x1c2   :  { %v481_v27 = vpop.f32.mrf.mxu1  ;;  %880 = vmatmul.mubr.bf16.gmra.mxu0 %v528_v22 }
 0x1c3   :  { %v482_v28 = vadd.f32 %v730_v58, %v481_v27  ;;  %v520_v29 = vmax.f32 %v490_v25, 0.0 }
 0x1c4   :  { %v857_v30 = vpop.f32.mrf.mxu1 }
 0x1c5   :  { %v518_v32 = vmax.f32 %v482_v28, 0.0  ;;  %v530_v36 = vpack.c.bf16 %v520_v29, %v519_v33  ;;  %v503_v40 = vadd.f32 %v857_v30, %v730_v58 }
 0x1c6   :  { %v494_v34 = vpop.f32.mrf.mxu1 }
 0x1c7   :  { %v529_v35 = vpack.c.bf16 %v518_v32, %v517_v31  ;;  %v495_v38 = vadd.f32 %v730_v58, %v494_v34  ;;  %v523_v46 = vmax.f32 %v503_v40, 0.0 }
 0x1c8   :  { %v858_v37 = vpop.f32.mrf.mxu1 }
 0x1c9   :  { %v506_v39 = vadd.f32 %v858_v37, %v730_v58  ;;  %883 = vmatprep.mubr.bf16.mxu1 %v529_v35  ;;  %v521_v44 = vmax.f32 %v495_v38, 0.0 }
 0x1ca   :  { %v497_v41 = vpop.f32.mrf.mxu1  ;;  %884 = vmatmul.mubr.bf16.vlgmr.msra.gmra.mxu1 %v530_v36 }
 0x1cb   :  { %v498_v42 = vadd.f32 %v730_v58, %v497_v41  ;;  %v524_v43 = vmax.f32 %v506_v39, 0.0 }
 0x1cd   :  { %v522_v45 = vmax.f32 %v498_v42, 0.0  ;;  %v532_v48 = vpack.c.bf16 %v524_v43, %v523_v46 }
 0x1cf   :  { %v531_v47 = vpack.c.bf16 %v522_v45, %v521_v44 }
 0x1d1   :  { %887 = vmatprep.mubr.bf16.mxu1 %v531_v47 }
 0x1d2   :  { %888 = vmatmul.mubr.bf16.gmra.mxu1 %v532_v48 }
 0x27a   :  { %v877_v49 = vpop.f32.mrf.mxu0 }
 0x27b   :  { %696 = vst [vmem:[%s1121_s5 + $0x10] sm:$0xff] %v877_v49 }
 0x27c   :  { %v631_v50 = vpop.f32.mrf.mxu0 }
 0x27d   :  { %694 = vst [vmem:[%s1121_s5] sm:$0xff] %v631_v50 }
 0x27e   :  { %v878_v51 = vpop.f32.mrf.mxu0 }
 0x27f   :  { %697 = vst [vmem:[%s1121_s5 + $0x18] sm:$0xff] %v878_v51 }
 0x280   :  { %v634_v52 = vpop.f32.mrf.mxu0 }
 0x281   :  { %695 = vst [vmem:[%s1121_s5 + $0x8] sm:$0xff] %v634_v52 }
 0x282   :  { %v881_v53 = vpop.f32.mrf.mxu0 }
 0x283   :  { %700 = vst [vmem:[%s1121_s5 + $0x30] sm:$0xff] %v881_v53 }
 0x284   :  { %v647_v54 = vpop.f32.mrf.mxu0 }
 0x285   :  { %698 = vst [vmem:[%s1121_s5 + $0x20] sm:$0xff] %v647_v54 }
 0x286   :  { %v882_v55 = vpop.f32.mrf.mxu0 }
 0x287   :  { %701 = vst [vmem:[%s1121_s5 + $0x38] sm:$0xff] %v882_v55 }
 0x288   :  { %v650_v56 = vpop.f32.mrf.mxu0 }
 0x289   :  { %699 = vst [vmem:[%s1121_s5 + $0x28] sm:$0xff] %v650_v56 }
 0x28a   :  { %v885_v57 = vpop.f32.mrf.mxu1 }
 0x28b   :  { %704 = vst [vmem:[%s1121_s5 + $0x50] sm:$0xff] %v885_v57 }
 0x28c   :  { %v663_v58 = vpop.f32.mrf.mxu1 }
 0x28d   :  { %702 = vst [vmem:[%s1121_s5 + $0x40] sm:$0xff] %v663_v58 }
 0x28e   :  { %v886_v59 = vpop.f32.mrf.mxu1 }
 0x28f   :  { %705 = vst [vmem:[%s1121_s5 + $0x58] sm:$0xff] %v886_v59 }
 0x290   :  { %v666_v60 = vpop.f32.mrf.mxu1 }
 0x291   :  { %703 = vst [vmem:[%s1121_s5 + $0x48] sm:$0xff] %v666_v60 }
 0x292   :  { %v889_v61 = vpop.f32.mrf.mxu1 }
 0x293   :  { %708 = vst [vmem:[%s1121_s5 + $0x70] sm:$0xff] %v889_v61 }
 0x294   :  { %v679_v62 = vpop.f32.mrf.mxu1 }
 0x295   :  { %706 = vst [vmem:[%s1121_s5 + $0x60] sm:$0xff] %v679_v62 }
 0x296   :  { %v890_v63 = vpop.f32.mrf.mxu1 }
 0x297   :  { %709 = vst [vmem:[%s1121_s5 + $0x78] sm:$0xff] %v890_v63 }
 0x298   :  { %v682_v0 = vpop.f32.mrf.mxu1 }
 0x299   :  { %707 = vst [vmem:[%s1121_s5 + $0x68] sm:$0xff] %v682_v0 }

// kernel: gcn_rating_prediction.3
= control target key start
LH: loop header
LB: loop body
LE: loop exit
PB: predicated region body
PF: predicated region fallthrough
CT: control target
= control target key end

     0   :  { %s954_s1 = inlined_call_operand.vmem [shape: bf16[128,128], index: 1, kind: input, shape index: {}]   ;;  %s955_s0 = inlined_call_operand.vmem [shape: bf16[128,128], index: 0, kind: input, shape index: {}]   ;;  %s956_s2 = inlined_call_operand.vmem [shape: bf16[128,128], index: 2, kind: input, shape index: {}]   ;;  %s957_s3 = inlined_call_operand.vmem [shape: f32[1,128], index: 3, kind: input, shape index: {}]   ;;  %s958_s4 = inlined_call_operand.vmem [shape: bf16[128,128], index: 4, kind: output, shape index: {}]  }
   0x1   :  { %v806_v0 = vld [vmem:[%s954_s1 + $0x38] sm:$0xff]   ;;  %v807_v1 = vld [vmem:[%s954_s1 + $0x30] sm:$0xff]   ;;  %v808_v2 = vld [vmem:[%s954_s1 + $0x28] sm:$0xff]  }
   0x2   :  { %742 = vmatprep.subr.bf16.mxu0 %v806_v0  ;;  %v809_v3 = vld [vmem:[%s954_s1 + $0x20] sm:$0xff]   ;;  %v810_v5 = vld [vmem:[%s954_s1 + $0x18] sm:$0xff]   ;;  %v811_v6 = vld [vmem:[%s954_s1 + $0x10] sm:$0xff]  }
   0x3   :  { %743 = vmatpush3.bf16.msra.mxu0 %v806_v0  ;;  %v814_v4 = vld [vmem:[%s955_s0] sm:$0xff]   ;;  %v822_v7 = vld [vmem:[%s956_s2 + $0x38] sm:$0xff]   ;;  %v823_v8 = vld [vmem:[%s956_s2 + $0x30] sm:$0xff]  }
   0x4   :  { %744 = vmatprep.subr.bf16.mxu0 %v807_v1  ;;  %758 = vmatprep.mubr.bf16.mxu0 %v814_v4  ;;  %v812_v9 = vld [vmem:[%s954_s1 + $0x8] sm:$0xff]   ;;  %v813_v11 = vld [vmem:[%s954_s1] sm:$0xff]   ;;  %v826_v13 = vld [vmem:[%s956_s2 + $0x18] sm:$0xff]  }
   0x5   :  { %774 = vmatprep.subr.bf16.mxu1 %v822_v7  ;;  %v824_v10 = vld [vmem:[%s956_s2 + $0x28] sm:$0xff]   ;;  %v825_v12 = vld [vmem:[%s956_s2 + $0x20] sm:$0xff]   ;;  %v816_v15 = vld [vmem:[%s955_s0 + $0x10] sm:$0xff]  }
   0x6   :  { %775 = vmatpush3.bf16.msra.mxu1 %v822_v7  ;;  %v815_v14 = vld [vmem:[%s955_s0 + $0x8] sm:$0xff]   ;;  %v827_v16 = vld [vmem:[%s956_s2 + $0x10] sm:$0xff]   ;;  %v817_v17 = vld [vmem:[%s955_s0 + $0x18] sm:$0xff]  }
   0x7   :  { %745 = vmatpush3.bf16.msra.mxu0 %v807_v1  ;;  %776 = vmatprep.subr.bf16.mxu1 %v823_v8  ;;  %v818_v18 = vld [vmem:[%s955_s0 + $0x20] sm:$0xff]   ;;  %v819_v19 = vld [vmem:[%s955_s0 + $0x28] sm:$0xff]   ;;  %v820_v20 = vld [vmem:[%s955_s0 + $0x30] sm:$0xff]  }
   0x8   :  { %746 = vmatprep.subr.bf16.mxu0 %v808_v2  ;;  %v821_v21 = vld [vmem:[%s955_s0 + $0x38] sm:$0xff]   ;;  %v828_v22 = vld [vmem:[%s956_s2 + $0x8] sm:$0xff]   ;;  %v829_v23 = vld [vmem:[%s956_s2] sm:$0xff]  }
   0x9   :  { %v622_v49 = vld [vmem:[%s957_s3] ss:$0 sm:$0xff] }
   0xa   :  { %777 = vmatpush3.bf16.msra.mxu1 %v823_v8 }
   0xb   :  { %747 = vmatpush3.bf16.msra.mxu0 %v808_v2  ;;  %778 = vmatprep.subr.bf16.mxu1 %v824_v10 }
   0xc   :  { %748 = vmatprep.subr.bf16.mxu0 %v809_v3 }
   0xe   :  { %779 = vmatpush3.bf16.msra.mxu1 %v824_v10 }
   0xf   :  { %749 = vmatpush3.bf16.msra.mxu0 %v809_v3  ;;  %780 = vmatprep.subr.bf16.mxu1 %v825_v12 }
  0x10   :  { %750 = vmatprep.subr.bf16.mxu0 %v810_v5 }
  0x12   :  { %781 = vmatpush3.bf16.msra.mxu1 %v825_v12 }
  0x13   :  { %751 = vmatpush3.bf16.msra.mxu0 %v810_v5  ;;  %782 = vmatprep.subr.bf16.mxu1 %v826_v13 }
  0x14   :  { %752 = vmatprep.subr.bf16.mxu0 %v811_v6 }
  0x16   :  { %783 = vmatpush3.bf16.msra.mxu1 %v826_v13 }
  0x17   :  { %753 = vmatpush3.bf16.msra.mxu0 %v811_v6  ;;  %784 = vmatprep.subr.bf16.mxu1 %v827_v16 }
  0x18   :  { %754 = vmatprep.subr.bf16.mxu0 %v812_v9 }
  0x1a   :  { %785 = vmatpush3.bf16.msra.mxu1 %v827_v16 }
  0x1b   :  { %755 = vmatpush3.bf16.msra.mxu0 %v812_v9  ;;  %786 = vmatprep.subr.bf16.mxu1 %v828_v22 }
  0x1c   :  { %756 = vmatprep.subr.bf16.mxu0 %v813_v11 }
  0x1e   :  { %787 = vmatpush3.bf16.msra.mxu1 %v828_v22 }
  0x1f   :  { %757 = vmatpush3.bf16.msra.mxu0 %v813_v11  ;;  %788 = vmatprep.subr.bf16.mxu1 %v829_v23 }
  0x22   :  { %759 = vmatmul.mubr.bf16.vlgmr.msra.gmra.mxu0 %v815_v14  ;;  %789 = vmatpush3.bf16.msra.mxu1 %v829_v23 }
  0x23   :  { %762 = vmatprep.mubr.bf16.mxu0 %v816_v15 }
  0x2a   :  { %763 = vmatmul.mubr.bf16.gmra.mxu0 %v817_v17 }
  0x2b   :  { %766 = vmatprep.mubr.bf16.mxu0 %v818_v18 }
  0x32   :  { %767 = vmatmul.mubr.bf16.gmra.mxu0 %v819_v19 }
  0x33   :  { %770 = vmatprep.mubr.bf16.mxu0 %v820_v20 }
  0x3a   :  { %771 = vmatmul.mubr.bf16.gmra.mxu0 %v821_v21 }
  0xe2   :  { %v760_v24 = vpop.f32.mrf.mxu0 }
  0xe4   :  { %v216_v25 = vpop.f32.mrf.mxu0 }
  0xe6   :  { %v761_v26 = vpop.f32.mrf.mxu0 }
  0xe7   :  { %v331_v29 = vpack.c.bf16 %v761_v26, %v760_v24 }
  0xe8   :  { %v219_v27 = vpop.f32.mrf.mxu0 }
  0xe9   :  { %v330_v28 = vpack.c.bf16 %v219_v27, %v216_v25 }
  0xea   :  { %v764_v30 = vpop.f32.mrf.mxu0 }
  0xeb   :  { %790 = vmatprep.mubr.bf16.mxu1 %v330_v28 }
  0xec   :  { %v232_v31 = vpop.f32.mrf.mxu0  ;;  %791 = vmatmul.mubr.bf16.vlgmr.msra.gmra.mxu1 %v331_v29 }
  0xee   :  { %v765_v32 = vpop.f32.mrf.mxu0 }
  0xef   :  { %v333_v35 = vpack.c.bf16 %v765_v32, %v764_v30 }
  0xf0   :  { %v235_v33 = vpop.f32.mrf.mxu0 }
  0xf1   :  { %v332_v34 = vpack.c.bf16 %v235_v33, %v232_v31 }
  0xf2   :  { %v768_v36 = vpop.f32.mrf.mxu0 }
  0xf3   :  { %794 = vmatprep.mubr.bf16.mxu1 %v332_v34 }
  0xf4   :  { %v248_v37 = vpop.f32.mrf.mxu0  ;;  %795 = vmatmul.mubr.bf16.gmra.mxu1 %v333_v35 }
  0xf6   :  { %v769_v38 = vpop.f32.mrf.mxu0 }
  0xf7   :  { %v335_v41 = vpack.c.bf16 %v769_v38, %v768_v36 }
  0xf8   :  { %v251_v39 = vpop.f32.mrf.mxu0 }
  0xf9   :  { %v334_v40 = vpack.c.bf16 %v251_v39, %v248_v37 }
  0xfa   :  { %v772_v42 = vpop.f32.mrf.mxu0 }
  0xfb   :  { %798 = vmatprep.mubr.bf16.mxu1 %v334_v40 }
  0xfc   :  { %v264_v43 = vpop.f32.mrf.mxu0  ;;  %799 = vmatmul.mubr.bf16.gmra.mxu1 %v335_v41 }
  0xfe   :  { %v773_v44 = vpop.f32.mrf.mxu0 }
  0xff   :  { %v337_v47 = vpack.c.bf16 %v773_v44, %v772_v42 }
 0x100   :  { %v267_v45 = vpop.f32.mrf.mxu0 }
 0x101   :  { %v336_v46 = vpack.c.bf16 %v267_v45, %v264_v43 }
 0x103   :  { %802 = vmatprep.mubr.bf16.mxu1 %v336_v46 }
 0x104   :  { %803 = vmatmul.mubr.bf16.gmra.mxu1 %v337_v47 }
 0x1ac   :  { %v792_v48 = vpop.f32.mrf.mxu1 }
 0x1ad   :  { %v452_v51 = vadd.f32 %v792_v48, %v622_v49 }
 0x1ae   :  { %v443_v50 = vpop.f32.mrf.mxu1 }
 0x1af   :  { %v444_v53 = vadd.f32 %v622_v49, %v443_v50  ;;  %v508_v56 = vmax.f32 %v452_v51, 0.0 }
 0x1b0   :  { %v793_v52 = vpop.f32.mrf.mxu1 }
 0x1b1   :  { %v455_v54 = vadd.f32 %v793_v52, %v622_v49  ;;  %v506_v60 = vmax.f32 %v444_v53, 0.0 }
 0x1b2   :  { %v446_v55 = vpop.f32.mrf.mxu1 }
 0x1b3   :  { %v509_v57 = vmax.f32 %v455_v54, 0.0  ;;  %v447_v58 = vadd.f32 %v622_v49, %v446_v55 }
 0x1b4   :  { %v796_v59 = vpop.f32.mrf.mxu1 }
 0x1b5   :  { %v671_v61 = vpack.c.bf16 %v509_v57, %v508_v56  ;;  %v507_v62 = vmax.f32 %v447_v58, 0.0  ;;  %v468_v1 = vadd.f32 %v796_v59, %v622_v49 }
 0x1b6   :  { %v459_v63 = vpop.f32.mrf.mxu1 }
 0x1b7   :  { %703 = vst [vmem:[%s958_s4 + $0x8] sm:$0xff] %v671_v61   ;;  %v666_v0 = vpack.c.bf16 %v507_v62, %v506_v60  ;;  %v460_v3 = vadd.f32 %v622_v49, %v459_v63  ;;  %v512_v6 = vmax.f32 %v468_v1, 0.0 }
 0x1b8   :  { %v797_v2 = vpop.f32.mrf.mxu1 }
 0x1b9   :  { %667 = vst [vmem:[%s958_s4] sm:$0xff] %v666_v0   ;;  %v471_v4 = vadd.f32 %v797_v2, %v622_v49  ;;  %v510_v10 = vmax.f32 %v460_v3, 0.0 }
 0x1ba   :  { %v462_v5 = vpop.f32.mrf.mxu1 }
 0x1bb   :  { %v513_v7 = vmax.f32 %v471_v4, 0.0  ;;  %v463_v8 = vadd.f32 %v622_v49, %v462_v5 }
 0x1bc   :  { %v800_v9 = vpop.f32.mrf.mxu1 }
 0x1bd   :  { %v681_v11 = vpack.c.bf16 %v513_v7, %v512_v6  ;;  %v511_v12 = vmax.f32 %v463_v8, 0.0  ;;  %v484_v15 = vadd.f32 %v800_v9, %v622_v49 }
 0x1be   :  { %v475_v13 = vpop.f32.mrf.mxu1 }
 0x1bf   :  { %705 = vst [vmem:[%s958_s4 + $0x18] sm:$0xff] %v681_v11   ;;  %v676_v14 = vpack.c.bf16 %v511_v12, %v510_v10  ;;  %v476_v17 = vadd.f32 %v622_v49, %v475_v13  ;;  %v516_v20 = vmax.f32 %v484_v15, 0.0 }
 0x1c0   :  { %v801_v16 = vpop.f32.mrf.mxu1 }
 0x1c1   :  { %704 = vst [vmem:[%s958_s4 + $0x10] sm:$0xff] %v676_v14   ;;  %v487_v18 = vadd.f32 %v801_v16, %v622_v49  ;;  %v514_v24 = vmax.f32 %v476_v17, 0.0 }
 0x1c2   :  { %v478_v19 = vpop.f32.mrf.mxu1 }
 0x1c3   :  { %v517_v21 = vmax.f32 %v487_v18, 0.0  ;;  %v479_v22 = vadd.f32 %v622_v49, %v478_v19 }
 0x1c4   :  { %v804_v23 = vpop.f32.mrf.mxu1 }
 0x1c5   :  { %v691_v25 = vpack.c.bf16 %v517_v21, %v516_v20  ;;  %v515_v26 = vmax.f32 %v479_v22, 0.0  ;;  %v500_v29 = vadd.f32 %v804_v23, %v622_v49 }
 0x1c6   :  { %v491_v27 = vpop.f32.mrf.mxu1 }
 0x1c7   :  { %707 = vst [vmem:[%s958_s4 + $0x28] sm:$0xff] %v691_v25   ;;  %v686_v28 = vpack.c.bf16 %v515_v26, %v514_v24  ;;  %v492_v31 = vadd.f32 %v622_v49, %v491_v27  ;;  %v520_v34 = vmax.f32 %v500_v29, 0.0 }
 0x1c8   :  { %v805_v30 = vpop.f32.mrf.mxu1 }
 0x1c9   :  { %706 = vst [vmem:[%s958_s4 + $0x20] sm:$0xff] %v686_v28   ;;  %v503_v32 = vadd.f32 %v805_v30, %v622_v49  ;;  %v518_v37 = vmax.f32 %v492_v31, 0.0 }
 0x1ca   :  { %v494_v33 = vpop.f32.mrf.mxu1 }
 0x1cb   :  { %v521_v35 = vmax.f32 %v503_v32, 0.0  ;;  %v495_v36 = vadd.f32 %v622_v49, %v494_v33 }
 0x1cd   :  { %v701_v38 = vpack.c.bf16 %v521_v35, %v520_v34  ;;  %v519_v39 = vmax.f32 %v495_v36, 0.0 }
 0x1cf   :  { %709 = vst [vmem:[%s958_s4 + $0x38] sm:$0xff] %v701_v38   ;;  %v696_v40 = vpack.c.bf16 %v519_v39, %v518_v37 }
 0x1d1   :  { %708 = vst [vmem:[%s958_s4 + $0x30] sm:$0xff] %v696_v40  }

</bundles_post_ra>
